<compile_context>
chip_gen: v7x
topology: tpu7x:2x2x1
jax: 0.10.0
libtpu: 0.0.40
codegen_flags: <defaults>
</compile_context>

<pallas_src>
import math

import jax
import jax.numpy as jnp
from jax.experimental import pallas as pl
from jax.experimental.pallas import tpu as pltpu


_MAX_ROWS_PER_TILE = 256  # rows (sub-blocks) per grid step; MXU M >= 128 when multi-tile


def _choose_subblock(F):
    """Smallest sub-block length S with S*F a multiple of 128 lanes, kept >= 8 so the
    MXU contraction depth and the fused lane width stay reasonable."""
    S = 128 // math.gcd(int(F), 128)
    while S < 8:
        S *= 2
    return S


def _make_kernel(normalize):
    def kernel(nm_ref, off_ref, norm_ref, trie_ref, invdim_ref, phase_ref, out_ref):
        # nm_ref     : [R, S]     bf16  not_mask rows (one S-position sub-block per row)
        # off_ref    : [R, 1]     f32   exclusive prefix count before each sub-block
        # norm_ref   : [R, 1]     f32   scale / (total + eps) per row (used iff normalize)
        # trie_ref   : [S, S*F]   bf16  trie[j, s*F + f] = (j <= s)
        # invdim_ref : [1, S*F]   f32   1 / dim_t[f], tiled over s
        # phase_ref  : [1, S*F]   f32   0 (even f) / pi/2 (odd f), tiled over s
        # out_ref    : [R, S*F]         lane-fused (s, f) output tile
        #
        # Fused local-cumsum + F-fold lane expansion on the MXU (0/1 bf16 operands,
        # f32 accumulation -> exact integer counts).
        x = jnp.dot(nm_ref[...], trie_ref[...], preferred_element_type=jnp.float32)
        x = x + off_ref[...]                      # global cumsum via precomputed offsets
        if normalize:
            x = x * norm_ref[...]                 # precomputed scale/(total+eps)
        # cos(x) = sin(x + pi/2): a single EUP transcendental per output element.
        out_ref[...] = jnp.sin(x * invdim_ref[...] + phase_ref[...]).astype(out_ref.dtype)

    return kernel


def position_embedding_sine_1d(mask, num_pos_feats=32, temperature=10000,
                               normalize=False, scale=None, out_dtype=jnp.float32):
    """mask: [B, L] bool (True = padded). Returns [B, L, num_pos_feats] in out_dtype.

    Pass out_dtype=jnp.bfloat16 to halve the output HBM writeback if downstream accepts it.
    """
    if scale is not None and normalize is False:
        raise ValueError("normalize should be True if scale is passed")
    if scale is None:
        scale = 2 * math.pi
    scale = float(scale)

    B, L = mask.shape
    F = int(num_pos_feats)
    S = _choose_subblock(F)
    lanes = S * F                                  # multiple of 128 by construction
    L_pad = ((L + S - 1) // S) * S
    nblk = L_pad // S

    not_mask = jnp.logical_not(mask)
    nm = not_mask.astype(jnp.float32)
    if L_pad != L:
        nm = jnp.pad(nm, ((0, 0), (0, L_pad - L)))           # pad as "masked"

    # Wrapper-side tiny prefix sums (replaces the in-kernel serial carry entirely).
    blk_sums = nm.reshape(B, nblk, S).sum(axis=-1)            # [B, nblk]
    off = jnp.cumsum(blk_sums, axis=1) - blk_sums             # exclusive prefix counts
    total = jnp.sum(nm, axis=1, keepdims=True)                # [B, 1] == x_embed[:, -1]
    norm = scale / (total + 1e-6)                             # no in-kernel divide

    num_rows = B * nblk
    nm_rows = nm.reshape(num_rows, S).astype(jnp.bfloat16)    # 0/1 values, exact in bf16
    off_rows = off.reshape(num_rows, 1)
    norm_rows = jnp.broadcast_to(norm, (B, nblk)).reshape(num_rows, 1)

    # Row tiling: single full block for small problems, else 256-row tiles (pad rows).
    if num_rows <= _MAX_ROWS_PER_TILE:
        R = num_rows
        rows_pad = num_rows
    else:
        R = _MAX_ROWS_PER_TILE
        rows_pad = ((num_rows + R - 1) // R) * R
    if rows_pad != num_rows:
        pad = rows_pad - num_rows
        nm_rows = jnp.pad(nm_rows, ((0, pad), (0, 0)))
        off_rows = jnp.pad(off_rows, ((0, pad), (0, 0)))
        norm_rows = jnp.pad(norm_rows, ((0, pad), (0, 0)))
    num_tiles = rows_pad // R

    # Host-precomputed constants (constant index_maps -> loaded once; only KBs now, so
    # default double-buffering is harmless).
    j = jnp.arange(S, dtype=jnp.int32)[:, None, None]
    s_idx = jnp.arange(S, dtype=jnp.int32)[None, :, None]
    trie = jnp.broadcast_to(j <= s_idx, (S, S, F)).reshape(S, lanes).astype(jnp.bfloat16)

    i = jnp.arange(F, dtype=jnp.float32)
    dim_t = jnp.asarray(temperature, jnp.float32) ** (2.0 * jnp.floor(i / 2.0) / F)
    inv_dim = jnp.tile(1.0 / dim_t, S)[None, :]               # [1, S*F]
    phase = jnp.where(jnp.arange(F) % 2 == 1, math.pi / 2.0, 0.0).astype(jnp.float32)
    phase = jnp.tile(phase, S)[None, :]                       # [1, S*F]

    kernel = _make_kernel(normalize)

    out_itemsize = jnp.dtype(out_dtype).itemsize
    cost = pl.CostEstimate(
        flops=int(2 * rows_pad * S * lanes + 4 * rows_pad * lanes),
        transcendentals=int(rows_pad * lanes),
        bytes_accessed=int(nm_rows.size * 2 + off_rows.size * 4 + norm_rows.size * 4
                           + trie.size * 2 + inv_dim.size * 4 + phase.size * 4
                           + rows_pad * lanes * out_itemsize),
    )

    out2d = pl.pallas_call(
        kernel,
        out_shape=jax.ShapeDtypeStruct((rows_pad, lanes), out_dtype),
        grid=(num_tiles,),
        in_specs=[
            pl.BlockSpec((R, S), lambda t: (t, 0)),
            pl.BlockSpec((R, 1), lambda t: (t, 0)),
            pl.BlockSpec((R, 1), lambda t: (t, 0)),
            pl.BlockSpec((S, lanes), lambda t: (0, 0)),
            pl.BlockSpec((1, lanes), lambda t: (0, 0)),
            pl.BlockSpec((1, lanes), lambda t: (0, 0)),
        ],
        out_specs=pl.BlockSpec((R, lanes), lambda t: (t, 0)),
        compiler_params=pltpu.CompilerParams(
            # No cross-tile carry -> row tiles are independent; v7x's two TensorCores
            # can split them.  Neutral (one TC) on v5e/v6e.
            dimension_semantics=("parallel",),
            vmem_limit_bytes=32 * 1024 * 1024,
        ),
        cost_estimate=cost,
    )(nm_rows, off_rows, norm_rows, trie, inv_dim, phase)

    # Pure reshape back to (B, L, F): row = b*nblk + blk, lane = s*F + f.
    out = out2d[:num_rows].reshape(B, L_pad, F)
    if L_pad != L:
        out = out[:, :L, :]
    return out


def _reference(mask, num_pos_feats=32, temperature=10000, normalize=False, scale=None):
    if scale is None:
        scale = 2 * math.pi
    not_mask = (~mask).astype(jnp.float32)
    x_embed = jnp.cumsum(not_mask, axis=1)
    if normalize:
        x_embed = x_embed / (x_embed[:, -1:] + 1e-6) * scale
    dim_t = jnp.arange(num_pos_feats, dtype=jnp.float32)
    dim_t = temperature ** (2 * (dim_t // 2) / num_pos_feats)
    pos_x = x_embed[:, :, None] / dim_t
    pos_x = jnp.stack((jnp.sin(pos_x[:, :, 0::2]), jnp.cos(pos_x[:, :, 1::2])),
                      axis=3).reshape(mask.shape[0], mask.shape[1], num_pos_feats)
    return pos_x


if __name__ == "__main__":
    key = jax.random.PRNGKey(0)
    B, C, L = 2, 4, 16
    F = 32

    # x only supplies device/dtype in the torch module; the math uses the mask.
    x = jax.random.normal(key, (B, C, L), dtype=jnp.float32)
    lengths = jnp.array([16, 11], dtype=jnp.int32)
    mask = jnp.arange(L)[None, :] >= lengths[:, None]          # [B, L] bool, True = pad

    # 1) normalize=False, small single-tile path
    out = jax.block_until_ready(position_embedding_sine_1d(mask, num_pos_feats=F))
    ref = _reference(mask, num_pos_feats=F)
    assert out.shape == (B, L, F)
    assert jnp.allclose(out, ref, atol=1e-4, rtol=1e-4), "mismatch (normalize=False)"

    # 2) normalize=True
    out_n = jax.block_until_ready(
        position_embedding_sine_1d(mask, num_pos_feats=F, normalize=True))
    ref_n = _reference(mask, num_pos_feats=F, normalize=True)
    assert jnp.allclose(out_n, ref_n, atol=1e-4, rtol=1e-4), "mismatch (normalize=True)"

    # 3) module default num_pos_feats=256 (different sub-block / lane width)
    out_d = jax.block_until_ready(position_embedding_sine_1d(mask, num_pos_feats=256))
    ref_d = _reference(mask, num_pos_feats=256)
    assert out_d.shape == (B, L, 256)
    assert jnp.allclose(out_d, ref_d, atol=1e-4, rtol=1e-4), "mismatch (F=256)"

    # 4) multi-tile path: >256 rows -> row padding + parallel grid over row tiles
    L2 = 1050
    lengths2 = jnp.array([1050, 700], dtype=jnp.int32)
    mask2 = jnp.arange(L2)[None, :] >= lengths2[:, None]
    out2 = jax.block_until_ready(
        position_embedding_sine_1d(mask2, num_pos_feats=F, normalize=True))
    ref2 = _reference(mask2, num_pos_feats=F, normalize=True)
    assert out2.shape == (B, L2, F)
    assert jnp.allclose(out2, ref2, atol=1e-4, rtol=1e-4), "mismatch (multi-tile)"

    print("KERNEL_OK")
</pallas_src>

<mosaic_0001>
module attributes {stable_mosaic.version = 11 : i64} {
  func.func @kernel(%arg0: i32, %arg1: memref<4x8xbf16, #tpu.memory_space<vmem>>, %arg2: memref<4x1xf32, #tpu.memory_space<vmem>>, %arg3: memref<4x1xf32, #tpu.memory_space<vmem>>, %arg4: memref<8x256xbf16, #tpu.memory_space<vmem>>, %arg5: memref<1x256xf32, #tpu.memory_space<vmem>>, %arg6: memref<1x256xf32, #tpu.memory_space<vmem>>, %arg7: memref<4x256xf32, #tpu.memory_space<vmem>>) attributes {dimension_semantics = [#tpu.dimension_semantics<parallel>], iteration_bounds = array<i64: 1>, scalar_prefetch = 0 : i64, scratch_operands = 0 : i64, tpu.core_type = #tpu.core_type<tc>, window_params = [{transform_indices = @transform_0, window_bounds = array<i64: 4, 8>}, {transform_indices = @transform_1, window_bounds = array<i64: 4, 1>}, {transform_indices = @transform_2, window_bounds = array<i64: 4, 1>}, {pipeline_mode = #tpu.pipeline_mode<synchronous>, transform_indices = @transform_3, window_bounds = array<i64: 8, 256>}, {pipeline_mode = #tpu.pipeline_mode<synchronous>, transform_indices = @transform_4, window_bounds = array<i64: 1, 256>}, {pipeline_mode = #tpu.pipeline_mode<synchronous>, transform_indices = @transform_5, window_bounds = array<i64: 1, 256>}, {transform_indices = @transform_6, window_bounds = array<i64: 4, 256>}]} {
    %c0 = arith.constant 0 : index
    %c0_0 = arith.constant 0 : index
    %0 = vector.load %arg1[%c0, %c0_0] : memref<4x8xbf16, #tpu.memory_space<vmem>>, vector<4x8xbf16>
    %c0_1 = arith.constant 0 : index
    %c0_2 = arith.constant 0 : index
    %1 = vector.load %arg4[%c0_1, %c0_2] : memref<8x256xbf16, #tpu.memory_space<vmem>>, vector<8x256xbf16>
    %cst = arith.constant dense<0.000000e+00> : vector<4x256xf32>
    %2 = tpu.matmul %0, %1, %cst {dimension_numbers = #tpu.dot_dimension_numbers<[1], [0], [0], [1], [0, 0, 1, 1], [], []>} : vector<4x8xbf16>, vector<8x256xbf16>, vector<4x256xf32> -> vector<4x256xf32>
    %c0_3 = arith.constant 0 : index
    %c0_4 = arith.constant 0 : index
    %3 = vector.load %arg2[%c0_3, %c0_4] : memref<4x1xf32, #tpu.memory_space<vmem>>, vector<4x1xf32>
    %4 = vector.broadcast %3 : vector<4x1xf32> to vector<4x256xf32>
    %5 = arith.addf %2, %4 : vector<4x256xf32>
    %c0_5 = arith.constant 0 : index
    %c0_6 = arith.constant 0 : index
    %6 = vector.load %arg5[%c0_5, %c0_6] : memref<1x256xf32, #tpu.memory_space<vmem>>, vector<1x256xf32>
    %7 = vector.broadcast %6 : vector<1x256xf32> to vector<4x256xf32>
    %8 = arith.mulf %5, %7 : vector<4x256xf32>
    %c0_7 = arith.constant 0 : index
    %c0_8 = arith.constant 0 : index
    %9 = vector.load %arg6[%c0_7, %c0_8] : memref<1x256xf32, #tpu.memory_space<vmem>>, vector<1x256xf32>
    %10 = vector.broadcast %9 : vector<1x256xf32> to vector<4x256xf32>
    %11 = arith.addf %8, %10 : vector<4x256xf32>
    %12 = math.sin %11 : vector<4x256xf32>
    %c0_9 = arith.constant 0 : index
    %c0_10 = arith.constant 0 : index
    %13 = vector.load %arg7[%c0_9, %c0_10] : memref<4x256xf32, #tpu.memory_space<vmem>>, vector<4x256xf32>
    tpu.vector_store %arg7[%c0_9, %c0_10], %12 {strides = array<i32>} : memref<4x256xf32, #tpu.memory_space<vmem>>, vector<4x256xf32>,
    return
  }
  func.func @transform_0(%arg0: i32) -> (i32, i32) {
    %c0_i32 = arith.constant 0 : i32
    %c0_i32_0 = arith.constant 0 : i32
    return %arg0, %c0_i32 : i32, i32
  }
  func.func @transform_1(%arg0: i32) -> (i32, i32) {
    %c0_i32 = arith.constant 0 : i32
    %c0_i32_0 = arith.constant 0 : i32
    return %arg0, %c0_i32 : i32, i32
  }
  func.func @transform_2(%arg0: i32) -> (i32, i32) {
    %c0_i32 = arith.constant 0 : i32
    %c0_i32_0 = arith.constant 0 : i32
    return %arg0, %c0_i32 : i32, i32
  }
  func.func @transform_3(%arg0: i32) -> (i32, i32) {
    %c0_i32 = arith.constant 0 : i32
    %c0_i32_0 = arith.constant 0 : i32
    %c0_i32_1 = arith.constant 0 : i32
    return %c0_i32, %c0_i32_0 : i32, i32
  }
  func.func @transform_4(%arg0: i32) -> (i32, i32) {
    %c0_i32 = arith.constant 0 : i32
    %c0_i32_0 = arith.constant 0 : i32
    %c0_i32_1 = arith.constant 0 : i32
    return %c0_i32, %c0_i32_0 : i32, i32
  }
  func.func @transform_5(%arg0: i32) -> (i32, i32) {
    %c0_i32 = arith.constant 0 : i32
    %c0_i32_0 = arith.constant 0 : i32
    %c0_i32_1 = arith.constant 0 : i32
    return %c0_i32, %c0_i32_0 : i32, i32
  }
  func.func @transform_6(%arg0: i32) -> (i32, i32) {
    %c0_i32 = arith.constant 0 : i32
    %c0_i32_0 = arith.constant 0 : i32
    return %arg0, %c0_i32 : i32, i32
  }
}

</mosaic_0001>

<bundles_post_ra>
// kernel: tpu_custom_call.1
= control target key start
LH: loop header
LB: loop body
LE: loop exit
PB: predicated region body
PF: predicated region fallthrough
CT: control target
= control target key end

     0   :  { %vm42_vm0 = vcmask 1043456   ;;  %v408_v3 = vmov 0   ;;  %s536_s0 = inlined_call_operand.vmem [shape: bf16[4,8], index: 0, kind: input, shape index: {}]   ;;  %s537_s1 = inlined_call_operand.vmem [shape: f32[4,1], index: 1, kind: input, shape index: {}]   ;;  %s538_s2 = inlined_call_operand.vmem [shape: f32[4,1], index: 2, kind: input, shape index: {}]   ;;  %s539_s3 = inlined_call_operand.vmem [shape: bf16[8,256], index: 3, kind: input, shape index: {}]   ;;  %s540_s4 = inlined_call_operand.vmem [shape: f32[1,256], index: 4, kind: input, shape index: {}]   ;;  %s541_s5 = inlined_call_operand.vmem [shape: f32[1,256], index: 5, kind: input, shape index: {}]   ;;  %s542_s6 = inlined_call_operand.hbm [shape: f32[4,256], index: 6, kind: output, shape index: {}]  }
   0x1   :  { %v26_v0 = vld [vmem:[%s539_s3] sm:$0xff]  ;;  %81 = vmatprep.mubr.bf16.mxu0 %v408_v3  ;;  %373 = vset.pattern.permute.xlu0 %v408_v3 }
   0x2   :  { %v346_v1 = vcombine.high %v26_v0, %v26_v0  ;;  %v345_v2 = vcombine.low %v26_v0, %v26_v0  ;;  %v27_v4 = vld [vmem:[%s537_s1] sm:$0xf] }
   0x3   :  { %11 = vsyncpa [#allocation3], 0  ;;  %30 = vperm.xlu0 %373, %v27_v4   ;;  %v25_v6 = vld [vmem:[%s536_s0] sm:$0x3]  ;;  %vm38_vm1 = vcmask 64512   ;;  %v92_v7 = vlaneseq  ;;  %s415_s0 = smov [#allocation2]  }
   0x4   :  { %347 = vmatprep.subr.msk.bf16.mxu0 %vm42_vm0, %v346_v1  ;;  %v44_v5 = vsel %vm42_vm0, %v345_v2, 0  ;;  %v90_v10 = vld [vmem:[%s540_s4] sm:$0x3]  ;;  %v409_v52 = vmov 683565275   ;;  %s337_s4 = sshll.u32 %s415_s0, 4  ;;  %s338_s4 = int_to_ptr.vmem [resolvable:$true] %s337_s4 }
   0x5   :  { %50 = vmatpush1.bf16.msra.mxu0 %v44_v5  ;;  %v93_v8 = vshrl.u32 %v92_v7, 7  ;;  %v104_v13 = vld [vmem:[%s541_s5] sm:$0x3]  ;;  %v410_v54 = vmov 2475754826   ;;  %s384_s5 = scalar_lea.vmem %s338_s4, 128  ;;  %p389_p1 = scmp.lt.s32.totalorder %s338_s4, %s338_s4 }
   0x6   :  { %v411_v56 = vmov 2131351028   ;;  %v412_v60 = vmov 2102212464   ;;  %v413_v63 = vmov 920167782   ;;  %p385_p0 = scmp.ne.s32.totalorder %s338_s4, %s384_s5  ;;  %p390_p2 = scmp.lt.s32.totalorder %s384_s5, %s384_s5 }
   0x7   :  { %v94_v9 = vsub.s32 0, %v93_v8  ;;  %v98_v11 = vsub.s32 1, %v93_v8  ;;  %v414_v2 = vmov 1326507024  }
   0x8   :  { %348 = vmatmul.mubr.msk.bf16.vlgmr.msra.gmra.mrb[0].mxu0 %vm38_vm1, %v25_v6  ;;  %p391_p3 = por %p390_p2, %p389_p1 }
   0x9   :  { %v95_v14 = vrot.slane %v90_v10, %v94_v9  ;;  %v99_v16 = vrot.slane %v90_v10, %v98_v11  ;;  %v109_v18 = vrot.slane %v104_v13, %v94_v9  ;;  %v113_v21 = vrot.slane %v104_v13, %v98_v11 }
   0xa   :  { %p392_p4 = pnand %p391_p3, %p385_p0 }
  0x82   :  { %v31_v12 = vpop.permute.xlu0 %30 }
  0xdb   :  { %v83_v15 = vpop.f32.mrb[0].mxu0 }
  0xdc   :  { %v84_v17 = vadd.f32 %v83_v15, %v31_v12  ;;  %v85_v19 = vpop.f32.mrb[1].mxu0 }
  0xdd   :  { %v86_v20 = vadd.f32 %v85_v19, %v31_v12  ;;  %v87_v22 = vpop.f32.mrb[2].mxu0 }
  0xde   :  { %v102_v23 = vmul.f32 %v95_v14, %v84_v17  ;;  %v88_v24 = vpop.f32.mrb[3].mxu0 }
  0xdf   :  { %v103_v25 = vmul.f32 %v99_v16, %v86_v20 }
  0xe0   :  { %v466_v26 = vadd.f32 %v109_v18, %v102_v23 }
  0xe1   :  { %v468_v27 = vadd.f32 %v113_v21, %v103_v25 }
  0xe2   :  { %v121_v28 = vand.u32 2139095040, %v466_v26  ;;  %v118_v29 = vand.u32 2147483647, %v466_v26  ;;  %vm120_vm0 = vcmp.lt.s32.totalorder %v466_v26, 0 }
  0xe3   :  { %v225_v30 = vand.u32 2139095040, %v468_v27  ;;  %v222_v31 = vand.u32 2147483647, %v468_v27 }
  0xe4   :  { %v122_v32 = vshrl.u32 %v121_v28, 23  ;;  %v125_v35 = vand.u32 8388607, %v118_v29  ;;  %vm119_vm1 = vcmp.le.f32.partialorder %v118_v29, 0.7853982 }
  0xe5   :  { %v226_v33 = vshrl.u32 %v225_v30, 23  ;;  %v229_v36 = vand.u32 8388607, %v222_v31 }
  0xe6   :  { %v349_v34 = vadd.s32 4294967169, %v122_v32  ;;  %v126_v40 = vor.u32 8388608, %v125_v35 }
  0xe7   :  { %v353_v37 = vadd.s32 4294967169, %v226_v33  ;;  %v230_v41 = vor.u32 8388608, %v229_v36 }
  0xe8   :  { %v128_v38 = vadd.s32 1, %v349_v34  ;;  %v480_v49 = vshll.u32 %v126_v40, 8 }
  0xe9   :  { %v232_v39 = vadd.s32 1, %v353_v37  ;;  %v482_v50 = vshll.u32 %v230_v41, 8 }
  0xea   :  { %vm129_vm2 = vcmp.gt.s32.totalorder %v128_v38, 0 }
  0xeb   :  { %v130_v42 = vsel %vm129_vm2, %v128_v38, 0  ;;  %vm233_vm3 = vcmp.gt.s32.totalorder %v232_v39, 0  ;;  %vm224_vm2 = vcmp.lt.s32.totalorder %v468_v27, 0 }
  0xec   :  { %v132_v43 = vand.u32 31, %v130_v42  ;;  %v234_v44 = vsel %vm233_vm3, %v232_v39, 0  ;;  %v131_v45 = vshrl.u32 %v130_v42, 5  ;;  %vm223_vm3 = vcmp.le.f32.partialorder %v222_v31, 0.7853982 }
  0xed   :  { %v236_v46 = vand.u32 31, %v234_v44  ;;  %v478_v48 = vshrl.u32 %v234_v44, 5 }
  0xee   :  { %v133_v47 = vsub.s32 32, %v132_v43  ;;  %v135_v53 = vshll.u32 %v409_v52, %v132_v43  ;;  %v138_v55 = vshll.u32 %v410_v54, %v132_v43  ;;  %v141_v57 = vshll.u32 %v411_v56, %v132_v43 }
  0xef   :  { %v237_v51 = vsub.s32 32, %v236_v46  ;;  %v144_v62 = vshll.u32 %v412_v60, %v132_v43  ;;  %v147_v1 = vshll.u32 %v413_v63, %v132_v43  ;;  %vm150_vm4 = vcmp.lt.s32.totalorder %v131_v45, 1 }
  0xf0   :  { %v136_v58 = vshrl.u32 %v410_v54, %v133_v47  ;;  %v139_v59 = vshrl.u32 %v411_v56, %v133_v47  ;;  %v142_v61 = vshrl.u32 %v412_v60, %v133_v47  ;;  %v145_v0 = vshrl.u32 %v413_v63, %v133_v47 }
  0xf1   :  { %v148_v3 = vshrl.u32 %v414_v2, %v133_v47  ;;  %v134_v4 = vshrl.u32 %v409_v52, %v133_v47  ;;  %vm152_vm5 = vcmp.lt.s32.totalorder %v131_v45, 3  ;;  %vm153_vm6 = vcmp.lt.s32.totalorder %v131_v45, 4 }
  0xf2   :  { %v137_v5 = vor.u32 %v136_v58, %v135_v53  ;;  %v140_v6 = vor.u32 %v139_v59, %v138_v55  ;;  %v143_v7 = vor.u32 %v142_v61, %v141_v57  ;;  %v146_v8 = vor.u32 %v145_v0, %v144_v62 }
  0xf3   :  { %v149_v9 = vor.u32 %v148_v3, %v147_v1  ;;  %v240_v17 = vshrl.u32 %v410_v54, %v237_v51  ;;  %vm151_vm7 = vcmp.lt.s32.totalorder %v131_v45, 2  ;;  %v239_v20 = vshll.u32 %v409_v52, %v236_v46 }
  0xf4   :  { %v154_v10 = vsel %vm150_vm4, %v134_v4, %v137_v5  ;;  %v155_v11 = vsel %vm153_vm6, %v143_v7, 2102212464  ;;  %v158_v12 = vsel %vm150_vm4, %v137_v5, %v140_v6  ;;  %v162_v13 = vsel %vm150_vm4, %v140_v6, %v143_v7 }
  0xf5   :  { %v156_v14 = vsel %vm152_vm5, %v140_v6, %v155_v11  ;;  %v159_v15 = vsel %vm153_vm6, %v146_v8, 920167782  ;;  %v163_v16 = vsel %vm153_vm6, %v149_v9, 1326507024  ;;  %v242_v24 = vshll.u32 %v410_v54, %v236_v46 }
  0xf6   :  { %v160_v18 = vsel %vm152_vm5, %v143_v7, %v159_v15  ;;  %v164_v19 = vsel %vm152_vm5, %v146_v8, %v163_v16  ;;  %v157_v21 = vsel %vm151_vm7, %v154_v10, %v156_v14  ;;  %v241_v33 = vor.u32 %v240_v17, %v239_v20 }
  0xf7   :  { %v161_v22 = vsel %vm151_vm7, %v158_v12, %v160_v18  ;;  %v165_v23 = vsel %vm151_vm7, %v162_v13, %v164_v19  ;;  %v243_v34 = vshrl.u32 %v411_v56, %v237_v51  ;;  %v245_v35 = vshll.u32 %v411_v56, %v236_v46 }
  0xf8   :  { %v485_v25 = vmul.u32.u64.low %v480_v49, %v165_v23  ;;  %v486_v28 = vmul.u32.u64.high %v480_v49, %v165_v23, %v485_v25  ;;  %v489_v30 = vmul.u32.u64.low %v480_v49, %v161_v22  ;;  %v490_v32 = vmul.u32.u64.high %v480_v49, %v161_v22, %v489_v30 }
  0xf9   :  { %v246_v36 = vshrl.u32 %v412_v60, %v237_v51  ;;  %v238_v37 = vshrl.u32 %v409_v52, %v237_v51  ;;  %v248_v38 = vshll.u32 %v412_v60, %v236_v46  ;;  %v249_v39 = vshrl.u32 %v413_v63, %v237_v51 }
  0xfa   :  { %v252_v40 = vshrl.u32 %v414_v2, %v237_v51  ;;  %v173_v41 = vmul.u32 %v480_v49, %v157_v21  ;;  %v244_v42 = vor.u32 %v243_v34, %v242_v24  ;;  %v251_v44 = vshll.u32 %v413_v63, %v236_v46 }
  0xfb   :  { %v247_v43 = vor.u32 %v246_v36, %v245_v35  ;;  %vm175_vm8 = vc.u32 %v486_v28, %v489_v30  ;;  %v176_v45 = vadd.s32 1, %v490_v32  ;;  %v250_v47 = vor.u32 %v249_v39, %v248_v38 }
  0xfc   :  { %vm254_vm9 = vcmp.lt.s32.totalorder %v478_v48, 1  ;;  %v253_v53 = vor.u32 %v252_v40, %v251_v44  ;;  %vm256_vm10 = vcmp.lt.s32.totalorder %v478_v48, 3  ;;  %vm257_vm11 = vcmp.lt.s32.totalorder %v478_v48, 4 }
  0xfd   :  { %v262_v52 = vsel %vm254_vm9, %v241_v33, %v244_v42  ;;  %v177_v51 = vsel %vm175_vm8, %v176_v45, %v490_v32  ;;  %v259_v54 = vsel %vm257_vm11, %v247_v43, 2102212464  ;;  %v263_v49 = vsel %vm257_vm11, %v250_v47, 920167782 }
  0xfe   :  { %v266_v55 = vsel %vm254_vm9, %v244_v42, %v247_v43  ;;  %v178_v56 = vadd.s32 %v177_v51, %v173_v41  ;;  %vm255_vm12 = vcmp.lt.s32.totalorder %v478_v48, 2  ;;  %v264_v46 = vsel %vm256_vm10, %v247_v43, %v263_v49 }
  0xff   :  { %v267_v57 = vsel %vm257_vm11, %v253_v53, 1326507024  ;;  %v258_v58 = vsel %vm254_vm9, %v238_v37, %v241_v33  ;;  %v260_v59 = vsel %vm256_vm10, %v244_v42, %v259_v54  ;;  %v265_v60 = vsel %vm255_vm12, %v262_v52, %v264_v46 }
 0x100   :  { %v268_v61 = vsel %vm256_vm10, %v250_v47, %v267_v57  ;;  %v179_v62 = vadd.s32 536870912, %v178_v56  ;;  %v501_v0 = vmul.u32.u64.low %v482_v50, %v265_v60  ;;  %v502_v1 = vmul.u32.u64.high %v482_v50, %v265_v60, %v501_v0 }
 0x101   :  { %v269_v63 = vsel %vm255_vm12, %v266_v55, %v268_v61  ;;  %v261_v5 = vsel %vm255_vm12, %v258_v58, %v260_v59  ;;  %v174_v21 = vadd.s32 %v489_v30, %v486_v28  ;;  %vm210_vm7 = vweird.f32 %v466_v26 }
 0x102   :  { %v505_v2 = vmul.u32.u64.low %v482_v50, %v269_v63  ;;  %v506_v3 = vmul.u32.u64.high %v482_v50, %v269_v63, %v505_v2  ;;  %v180_v4 = vshrl.u32 %v179_v62, 30  ;;  %v280_v48 = vadd.s32 1, %v502_v1 }
 0x103   :  { %v277_v7 = vmul.u32 %v482_v50, %v261_v5  ;;  %vm314_vm11 = vweird.f32 %v468_v27 }
 0x104   :  { %v181_v6 = vshll.u32 %v180_v4, 30  ;;  %vm279_vm13 = vc.u32 %v506_v3, %v501_v0  ;;  %v278_v41 = vadd.s32 %v501_v0, %v506_v3  ;;  %v204_v30 = vsub.s32 4, %v180_v4 }
 0x105   :  { %v281_v9 = vsel %vm279_vm13, %v280_v48, %v502_v1 }
 0x106   :  { %v182_v8 = vsub.s32 %v178_v56, %v181_v6  ;;  %v282_v10 = vadd.s32 %v281_v9, %v277_v7  ;;  %v205_v49 = vsel %vm120_vm0, %v204_v30, %v180_v4 }
 0x107   :  { %v207_v46 = vsel %vm119_vm1, 0, %v205_v49 }
 0x108   :  { %v184_v11 = vsub.s32 0, %v182_v8  ;;  %v283_v12 = vadd.s32 536870912, %v282_v10  ;;  %v211_v61 = vadd.s32 3, %v207_v46 }
 0x10a   :  { %v350_v13 = vmin.u32 %v184_v11, %v182_v8  ;;  %v284_v14 = vshrl.u32 %v283_v12, 30  ;;  %v212_v0 = vand.u32 3, %v211_v61 }
 0x10c   :  { %v186_v15 = vclz %v350_v13  ;;  %v285_v16 = vshll.u32 %v284_v14, 30  ;;  %v308_v60 = vsub.s32 4, %v284_v14  ;;  %vm217_vm4 = vcmp.eq.s32.totalorder %v212_v0, 2 }
 0x10d   :  { %vm214_vm5 = vcmp.eq.s32.totalorder %v212_v0, 0  ;;  %vm213_vm6 = vcmp.lt.s32.totalorder %v212_v0, 2 }
 0x10e   :  { %v351_v17 = vadd.s32 4294967294, %v186_v15  ;;  %v286_v18 = vsub.s32 %v282_v10, %v285_v16  ;;  %v309_v63 = vsel %vm224_vm2, %v308_v60, %v284_v14 }
 0x10f   :  { %v311_v3 = vsel %vm223_vm3, 0, %v309_v63 }
 0x110   :  { %vm352_vm14 = vcmp.lt.s32.totalorder %v351_v17, 0  ;;  %v288_v20 = vsub.s32 0, %v286_v18  ;;  %v315_v7 = vadd.s32 3, %v311_v3 }
 0x111   :  { %v189_v19 = vsel %vm352_vm14, 0, %v351_v17 }
 0x112   :  { %v190_v50 = vsub.s32 32, %v189_v19  ;;  %v194_v22 = vsub.s32 4294967266, %v189_v19  ;;  %v354_v23 = vmin.u32 %v288_v20, %v286_v18  ;;  %v191_v24 = vshll.u32 %v182_v8, %v189_v19 }
 0x113   :  { %v316_v10 = vand.u32 3, %v315_v7 }
 0x114   :  { %v192_v25 = vshrl.u32 %v174_v21, %v190_v50  ;;  %v195_v32 = vadd.s32 127, %v194_v22  ;;  %v290_v33 = vclz %v354_v23 }
 0x115   :  { %vm321_vm8 = vcmp.eq.s32.totalorder %v316_v10, 2  ;;  %vm318_vm9 = vcmp.eq.s32.totalorder %v316_v10, 0  ;;  %vm317_vm10 = vcmp.lt.s32.totalorder %v316_v10, 2 }
 0x116   :  { %v193_v34 = vor.u32 %v192_v25, %v191_v24  ;;  %v196_v35 = vshll.u32 %v195_v32, 23  ;;  %v355_v36 = vadd.s32 4294967294, %v290_v33 }
 0x118   :  { %v197_v37 = vor.u32 4788187, %v196_v35  ;;  %vm356_vm15 = vcmp.lt.s32.totalorder %v355_v36, 0  ;;  %v200_v39 = vcvt.s32.f32 %v193_v34 }
 0x119   :  { %v293_v40 = vsel %vm356_vm15, 0, %v355_v36 }
 0x11a   :  { %v198_v38 = vand.u32 2147483647, %v197_v37  ;;  %v294_v42 = vsub.s32 32, %v293_v40  ;;  %v298_v43 = vsub.s32 4294967266, %v293_v40  ;;  %v295_v44 = vshll.u32 %v286_v18, %v293_v40 }
 0x11c   :  { %v201_v28 = vmul.f32 %v200_v39, %v198_v38  ;;  %v296_v45 = vshrl.u32 %v278_v41, %v294_v42  ;;  %v299_v47 = vadd.s32 127, %v298_v43 }
 0x11e   :  { %v202_v53 = vxor.u32 2147483648, %v201_v28  ;;  %v297_v52 = vor.u32 %v296_v45, %v295_v44  ;;  %v300_v51 = vshll.u32 %v299_v47, 23 }
 0x120   :  { %v203_v54 = vsel %vm120_vm0, %v202_v53, %v201_v28  ;;  %v301_v56 = vor.u32 4788187, %v300_v51  ;;  %v304_v58 = vcvt.s32.f32 %v297_v52 }
 0x121   :  { %v206_v55 = vsel %vm119_vm1, %v466_v26, %v203_v54 }
 0x122   :  { %376 = vcosq.f32 %v206_v55  ;;  %v302_v57 = vand.u32 2147483647, %v301_v56 }
 0x123   :  { %378 = vsinq.f32 %v206_v55 }
 0x124   :  { %v305_v59 = vmul.f32 %v304_v58, %v302_v57 }
 0x126   :  { %v306_v62 = vxor.u32 2147483648, %v305_v59 }
 0x128   :  { %v307_v29 = vsel %vm224_vm2, %v306_v62, %v305_v59 }
 0x129   :  { %v310_v1 = vsel %vm223_vm3, %v468_v27, %v307_v29 }
 0x12a   :  { %380 = vcosq.f32 %v310_v1 }
 0x12b   :  { %382 = vsinq.f32 %v310_v1 }
 0x12c   :  { %v377_v2 = vpop.eup %376 }
 0x12d   :  { %v379_v4 = vpop.eup %378  ;;  %v218_v5 = vxor.u32 2147483648, %v377_v2 }
 0x12e   :  { %v215_v6 = vxor.u32 2147483648, %v379_v4 }
 0x12f   :  { %v219_v48 = vsel %vm217_vm4, %v218_v5, %v379_v4 }
 0x130   :  { %v216_v8 = vsel %vm214_vm5, %v377_v2, %v215_v6 }
 0x131   :  { %v220_v31 = vsel %vm213_vm6, %v216_v8, %v219_v48 }
 0x132   :  { %v221_v9 = vsel %vm210_vm7, nan, %v220_v31 }
 0x134   :  { %v381_v11 = vpop.eup %380 }
 0x135   :  { %v383_v12 = vpop.eup %382  ;;  %v322_v13 = vxor.u32 2147483648, %v381_v11 }
 0x136   :  { %v319_v14 = vxor.u32 2147483648, %v383_v12 }
 0x137   :  { %v323_v15 = vsel %vm321_vm8, %v322_v13, %v383_v12 }
 0x138   :  { %v320_v16 = vsel %vm318_vm9, %v381_v11, %v319_v14 }
 0x139   :  { %v324_v17 = vsel %vm317_vm10, %v320_v16, %v323_v15 }
 0x13a   :  { %v325_v18 = vsel %vm314_vm11, nan, %v324_v17 }
 0x13b   :  { %v328_v19 = vcombine.low %v221_v9, %v325_v18 }
 0x13d   :  { %330 = vst [vmem:[#allocation2] sm:$0xff] %v328_v19 }
 0x13e   :  { %395 = shalt.err (!%p392_p4)
}
 0x13f   :  { %s396_s30 = scalar_lea.hbm %s542_s6, 128 }
 0x140   :  { %p397_p5 = scmp.ne.s32.totalorder %s542_s6, %s396_s30  ;;  %p400_p6 = scmp.lt.u32.totalorder %s396_s30, %s542_s6 }
 0x142   :  { %p402_p7 = pnand %p400_p6, %p397_p5 }
 0x144   :  { %405 = shalt.err (!%p402_p7)
}
 0x145   :  { %340 = dma.vmem_to_hbm [thread:$0]  %s338_s4, 128, %s542_s6, [#allocation3]  }
 0x146   :  { %406 = dma.done.wait [#allocation3], 128  }
 0x147   :  { %407 = vsyncadd [#allocation3], 4294967168 }
 0x148   :  { %344 = vsyncpa [#allocation3], 1 }

</bundles_post_ra>
